<compile_context>
chip_gen: v5e
topology: v5e:2x2
jax: 0.10.0
libtpu: 0.0.40
codegen_flags: <defaults>
</compile_context>

<pallas_src>
import functools

import jax
import jax.numpy as jnp
from jax.experimental import pallas as pl
from jax.experimental.pallas import tpu as pltpu


def _emb_cont_kernel(ids_ref, cont_ref, w_ref, gamma_ref, beta_ref, out_ref,
                     *, emb_dim, n_cont, out_pad, eps):
    # ids_ref:   [TB, n_cat]  int32, already offset into the packed vocab axis
    # cont_ref:  [TB, n_cont] f32
    # w_ref:     [total_vocab, emb_dim] bf16, block-diagonal packed embedding tables (resident)
    # gamma/beta:[1, n_cont]  f32 LayerNorm affine params (resident)
    # out_ref:   [TB, out_pad] f32 (lane-padded to a multiple of 128)
    ids = ids_ref[...]
    tb, n_cat = ids.shape
    total_vocab = w_ref.shape[0]

    # 2-D multi-hot, accumulated one categorical column at a time (f32 VPU work only;
    # peak live data is [TB, total_vocab], no 3-D intermediate, no axis=1 relayout).
    lane_iota = jax.lax.broadcasted_iota(jnp.int32, (tb, total_vocab), 1)
    multi_hot = jnp.zeros((tb, total_vocab), jnp.float32)
    for c in range(n_cat):  # n_cat is small and compile-time static
        multi_hot = multi_hot + (lane_iota == ids[:, c:c + 1]).astype(jnp.float32)

    # Embedding lookup + concat of all columns == one bf16 MXU matmul with f32 accumulation.
    # padding_idx rows of W are zero, so they contribute 0 (matches nn.Embedding padding_idx=0).
    emb = jnp.dot(multi_hot.astype(jnp.bfloat16), w_ref[...],
                  preferred_element_type=jnp.float32)            # [TB, emb_dim]

    # Embedding dropout: inference mode -> identity.
    # TODO(synk): training-mode dropout (pltpu.prng_*) not implemented; eval semantics only.

    # Continuous branch: LayerNorm over the continuous-feature axis (biased variance, as torch).
    x_cont = cont_ref[...]
    mu = jnp.mean(x_cont, axis=-1, keepdims=True)
    var = jnp.mean((x_cont - mu) ** 2, axis=-1, keepdims=True)
    x_norm = (x_cont - mu) * jax.lax.rsqrt(var + eps)
    x_norm = x_norm * gamma_ref[...] + beta_ref[...]

    # Single lane-dense store: [emb | cont | zero pad] padded to out_pad lanes.
    pieces = [emb, x_norm]
    pad = out_pad - (emb_dim + n_cont)
    if pad > 0:
        pieces.append(jnp.zeros((tb, pad), jnp.float32))
    out_ref[...] = jnp.concatenate(pieces, axis=-1)


def embeddings_and_continuous(x, column_idx, embed_input, continuous_cols, params,
                              eps=1e-5, tile_b=256):
    """Forward pass. x: [B, n_cols] f32. Returns [B, emb_out_dim + n_cont] f32."""
    cat_cols = [c for c, _, _ in embed_input]
    cat_idx = jnp.array([column_idx[c] for c in cat_cols], dtype=jnp.int32)
    cont_idx = jnp.array([column_idx[c] for c in continuous_cols], dtype=jnp.int32)

    # --- glue: slice categorical / continuous columns, add packed-vocab offsets (int32) ---
    ids = x[:, cat_idx].astype(jnp.int32) + params["vocab_offsets"][None, :]   # [B, n_cat]
    cont = x[:, cont_idx].astype(jnp.float32)                                  # [B, n_cont]

    w = params["packed_weight"]          # [total_vocab, emb_dim] bf16
    gamma = params["ln_gamma"]           # [1, n_cont] f32
    beta = params["ln_beta"]             # [1, n_cont] f32

    b = x.shape[0]
    n_cat = ids.shape[1]
    n_cont = cont.shape[1]
    total_vocab, emb_dim = w.shape
    out_dim = emb_dim + n_cont
    out_pad = 128 * pl.cdiv(out_dim, 128)        # lane-dense output width

    # Batch tiling (128 is a good choice on v5e, 256 on v6e/v7x); pad B to a tile multiple.
    tile_b = min(tile_b, 8 * pl.cdiv(b, 8))
    b_pad = tile_b * pl.cdiv(b, tile_b)
    if b_pad != b:
        ids = jnp.pad(ids, ((0, b_pad - b), (0, 0)))
        cont = jnp.pad(cont, ((0, b_pad - b), (0, 0)))

    kernel = functools.partial(_emb_cont_kernel, emb_dim=emb_dim, n_cont=n_cont,
                               out_pad=out_pad, eps=eps)

    out = pl.pallas_call(
        kernel,
        out_shape=jax.ShapeDtypeStruct((b_pad, out_pad), jnp.float32),
        grid=(b_pad // tile_b,),
        in_specs=[
            pl.BlockSpec((tile_b, n_cat), lambda i: (i, 0)),          # ids: batch-tiled
            pl.BlockSpec((tile_b, n_cont), lambda i: (i, 0)),         # cont: batch-tiled
            pl.BlockSpec((total_vocab, emb_dim), lambda i: (0, 0)),   # W: VMEM-resident
            pl.BlockSpec((1, n_cont), lambda i: (0, 0)),              # gamma: resident
            pl.BlockSpec((1, n_cont), lambda i: (0, 0)),              # beta: resident
        ],
        out_specs=pl.BlockSpec((tile_b, out_pad), lambda i: (i, 0)),
        compiler_params=pltpu.CompilerParams(
            dimension_semantics=("parallel",)),                       # megacore on v7x
    )(ids, cont, w, gamma, beta)

    return out[:b, :out_dim]


def init_params(embed_input, n_cont, key):
    """Deterministic init. Packs per-column embedding tables block-diagonally (stored bf16)."""
    vocab_sizes = [v + 1 for _, v, _ in embed_input]     # +1 like nn.Embedding(val+1, dim)
    dims = [d for _, _, d in embed_input]
    total_vocab = sum(vocab_sizes)
    total_dim = sum(dims)

    keys = jax.random.split(key, len(embed_input))
    packed = jnp.zeros((total_vocab, total_dim), dtype=jnp.float32)
    offsets = []
    r_off = 0
    c_off = 0
    for k, vs, d in zip(keys, vocab_sizes, dims):
        t = jax.random.normal(k, (vs, d), dtype=jnp.float32)
        t = t.at[0].set(0.0)                             # padding_idx=0 row is zero
        packed = packed.at[r_off:r_off + vs, c_off:c_off + d].set(t)
        offsets.append(r_off)
        r_off += vs
        c_off += d

    return {
        # bf16 weights: full-rate MXU inputs; one-hot values are exact in bf16.
        "packed_weight": packed.astype(jnp.bfloat16),
        "vocab_offsets": jnp.array(offsets, dtype=jnp.int32),
        "ln_gamma": jnp.ones((1, n_cont), dtype=jnp.float32),   # nn.LayerNorm defaults
        "ln_beta": jnp.zeros((1, n_cont), dtype=jnp.float32),
    }


def reference(x, column_idx, embed_input, continuous_cols, params, eps=1e-5):
    """Pure-JAX reference mirroring the PyTorch forward (eval mode), using the same bf16 weights."""
    w = params["packed_weight"].astype(jnp.float32)
    offs = params["vocab_offsets"]
    embeds = []
    c_off = 0
    for i, (col, _, d) in enumerate(embed_input):
        idx = x[:, column_idx[col]].astype(jnp.int32) + offs[i]
        embeds.append(w[idx, c_off:c_off + d])
        c_off += d
    out = jnp.concatenate(embeds, axis=1)
    cont_idx = jnp.array([column_idx[c] for c in continuous_cols])
    xc = x[:, cont_idx].astype(jnp.float32)
    mu = jnp.mean(xc, axis=-1, keepdims=True)
    var = jnp.mean((xc - mu) ** 2, axis=-1, keepdims=True)
    xc = (xc - mu) * jax.lax.rsqrt(var + eps)
    xc = xc * params["ln_gamma"] + params["ln_beta"]
    return jnp.concatenate([out, xc], axis=1)


if __name__ == "__main__":
    key = jax.random.PRNGKey(0)

    # Module config (small, deterministic).
    embed_input = [("a", 5, 8), ("b", 8, 4), ("c", 4, 4)]        # (col, vocab, emb_dim)
    continuous_cols = ["x1", "x2", "x3"]
    column_idx = {"a": 0, "b": 1, "c": 2, "x1": 3, "x2": 4, "x3": 5}
    batch = 16                                                   # 2 batch tiles of 8 below
    n_cols = len(column_idx)

    k_tab, k_cat, k_cont = jax.random.split(key, 3)
    params = init_params(embed_input, len(continuous_cols), k_tab)

    # Build input X [B, n_cols]: categorical ids stored as floats + continuous features.
    cat_vals = [
        jax.random.randint(jax.random.fold_in(k_cat, i), (batch,), 0, v + 1)
        for i, (_, v, _) in enumerate(embed_input)
    ]
    cont_vals = jax.random.normal(k_cont, (batch, len(continuous_cols)), dtype=jnp.float32)
    x = jnp.zeros((batch, n_cols), dtype=jnp.float32)
    for i, (col, _, _) in enumerate(embed_input):
        x = x.at[:, column_idx[col]].set(cat_vals[i].astype(jnp.float32))
    for j, col in enumerate(continuous_cols):
        x = x.at[:, column_idx[col]].set(cont_vals[:, j])

    out = embeddings_and_continuous(x, column_idx, embed_input, continuous_cols, params,
                                    tile_b=8)
    out = jax.block_until_ready(out)

    ref = reference(x, column_idx, embed_input, continuous_cols, params)
    expected_dim = sum(d for _, _, d in embed_input) + len(continuous_cols)
    assert out.shape == (batch, expected_dim)
    assert jnp.allclose(out, ref, atol=1e-5, rtol=1e-5), "mismatch vs reference"

    print("KERNEL_OK")
</pallas_src>

<mosaic_0001>
module attributes {stable_mosaic.version = 11 : i64} {
  func.func @_emb_cont_kernel(%arg0: i32, %arg1: memref<8x3xi32, #tpu.memory_space<vmem>>, %arg2: memref<8x3xf32, #tpu.memory_space<vmem>>, %arg3: memref<20x16xbf16, #tpu.memory_space<vmem>>, %arg4: memref<1x3xf32, #tpu.memory_space<vmem>>, %arg5: memref<1x3xf32, #tpu.memory_space<vmem>>, %arg6: memref<8x128xf32, #tpu.memory_space<vmem>>) attributes {dimension_semantics = [#tpu.dimension_semantics<parallel>], iteration_bounds = array<i64: 2>, scalar_prefetch = 0 : i64, scratch_operands = 0 : i64, tpu.core_type = #tpu.core_type<tc>, window_params = [{transform_indices = @transform_0, window_bounds = array<i64: 8, 3>}, {transform_indices = @transform_1, window_bounds = array<i64: 8, 3>}, {pipeline_mode = #tpu.pipeline_mode<synchronous>, transform_indices = @transform_2, window_bounds = array<i64: 20, 16>}, {pipeline_mode = #tpu.pipeline_mode<synchronous>, transform_indices = @transform_3, window_bounds = array<i64: 1, 3>}, {pipeline_mode = #tpu.pipeline_mode<synchronous>, transform_indices = @transform_4, window_bounds = array<i64: 1, 3>}, {transform_indices = @transform_5, window_bounds = array<i64: 8, 128>}]} {
    %c0 = arith.constant 0 : index
    %c0_0 = arith.constant 0 : index
    %0 = vector.load %arg1[%c0, %c0_0] : memref<8x3xi32, #tpu.memory_space<vmem>>, vector<8x3xi32>
    %1 = tpu.iota {dimensions = array<i32: 1>} : vector<8x20xi32>
    %cst = arith.constant 0.000000e+00 : f32
    %2 = vector.broadcast %cst : f32 to vector<8x20xf32>
    %3 = vector.extract_strided_slice %0 {offsets = [0, 0], sizes = [8, 1], strides = [1, 1]} : vector<8x3xi32> to vector<8x1xi32>
    %4 = vector.broadcast %3 : vector<8x1xi32> to vector<8x20xi32>
    %5 = arith.cmpi eq, %1, %4 : vector<8x20xi32>
    %6 = arith.extui %5 : vector<8x20xi1> to vector<8x20xi32>
    %7 = arith.sitofp %6 : vector<8x20xi32> to vector<8x20xf32>
    %8 = arith.addf %2, %7 : vector<8x20xf32>
    %9 = vector.extract_strided_slice %0 {offsets = [0, 1], sizes = [8, 1], strides = [1, 1]} : vector<8x3xi32> to vector<8x1xi32>
    %10 = vector.broadcast %9 : vector<8x1xi32> to vector<8x20xi32>
    %11 = arith.cmpi eq, %1, %10 : vector<8x20xi32>
    %12 = arith.extui %11 : vector<8x20xi1> to vector<8x20xi32>
    %13 = arith.sitofp %12 : vector<8x20xi32> to vector<8x20xf32>
    %14 = arith.addf %8, %13 : vector<8x20xf32>
    %15 = vector.extract_strided_slice %0 {offsets = [0, 2], sizes = [8, 1], strides = [1, 1]} : vector<8x3xi32> to vector<8x1xi32>
    %16 = vector.broadcast %15 : vector<8x1xi32> to vector<8x20xi32>
    %17 = arith.cmpi eq, %1, %16 : vector<8x20xi32>
    %18 = arith.extui %17 : vector<8x20xi1> to vector<8x20xi32>
    %19 = arith.sitofp %18 : vector<8x20xi32> to vector<8x20xf32>
    %20 = arith.addf %14, %19 : vector<8x20xf32>
    %21 = arith.truncf %20 : vector<8x20xf32> to vector<8x20xbf16>
    %c0_1 = arith.constant 0 : index
    %c0_2 = arith.constant 0 : index
    %22 = vector.load %arg3[%c0_1, %c0_2] : memref<20x16xbf16, #tpu.memory_space<vmem>>, vector<20x16xbf16>
    %cst_3 = arith.constant dense<0.000000e+00> : vector<8x16xf32>
    %23 = tpu.matmul %21, %22, %cst_3 {dimension_numbers = #tpu.dot_dimension_numbers<[1], [0], [0], [1], [0, 0, 1, 1], [], []>} : vector<8x20xbf16>, vector<20x16xbf16>, vector<8x16xf32> -> vector<8x16xf32>
    %c0_4 = arith.constant 0 : index
    %c0_5 = arith.constant 0 : index
    %24 = vector.load %arg2[%c0_4, %c0_5] : memref<8x3xf32, #tpu.memory_space<vmem>>, vector<8x3xf32>
    %cst_6 = arith.constant dense<0.000000e+00> : vector<8xf32>
    %25 = vector.multi_reduction <add>, %24, %cst_6 [1] : vector<8x3xf32> to vector<8xf32>
    %26 = vector.shape_cast %25 : vector<8xf32> to vector<8x1xf32>
    %cst_7 = arith.constant 3.000000e+00 : f32
    %27 = vector.broadcast %cst_7 : f32 to vector<8x1xf32>
    %28 = arith.divf %26, %27 : vector<8x1xf32>
    %29 = vector.broadcast %28 : vector<8x1xf32> to vector<8x3xf32>
    %30 = arith.subf %24, %29 : vector<8x3xf32>
    %31 = arith.mulf %30, %30 : vector<8x3xf32>
    %cst_8 = arith.constant dense<0.000000e+00> : vector<8xf32>
    %32 = vector.multi_reduction <add>, %31, %cst_8 [1] : vector<8x3xf32> to vector<8xf32>
    %33 = vector.shape_cast %32 : vector<8xf32> to vector<8x1xf32>
    %cst_9 = arith.constant 3.000000e+00 : f32
    %34 = vector.broadcast %cst_9 : f32 to vector<8x1xf32>
    %35 = arith.divf %33, %34 : vector<8x1xf32>
    %36 = vector.broadcast %28 : vector<8x1xf32> to vector<8x3xf32>
    %37 = arith.subf %24, %36 : vector<8x3xf32>
    %cst_10 = arith.constant 9.99999974E-6 : f32
    %38 = vector.broadcast %cst_10 : f32 to vector<8x1xf32>
    %39 = arith.addf %35, %38 : vector<8x1xf32>
    %40 = math.rsqrt %39 : vector<8x1xf32>
    %41 = vector.broadcast %40 : vector<8x1xf32> to vector<8x3xf32>
    %42 = arith.mulf %37, %41 : vector<8x3xf32>
    %c0_11 = arith.constant 0 : index
    %c0_12 = arith.constant 0 : index
    %43 = vector.load %arg4[%c0_11, %c0_12] : memref<1x3xf32, #tpu.memory_space<vmem>>, vector<1x3xf32>
    %44 = vector.broadcast %43 : vector<1x3xf32> to vector<8x3xf32>
    %45 = arith.mulf %42, %44 : vector<8x3xf32>
    %c0_13 = arith.constant 0 : index
    %c0_14 = arith.constant 0 : index
    %46 = vector.load %arg5[%c0_13, %c0_14] : memref<1x3xf32, #tpu.memory_space<vmem>>, vector<1x3xf32>
    %47 = vector.broadcast %46 : vector<1x3xf32> to vector<8x3xf32>
    %48 = arith.addf %45, %47 : vector<8x3xf32>
    %cst_15 = arith.constant 0.000000e+00 : f32
    %49 = vector.broadcast %cst_15 : f32 to vector<8x109xf32>
    %50 = tpu.concatenate %23, %48, %49 in 1 : vector<8x16xf32>, vector<8x3xf32>, vector<8x109xf32> -> vector<8x128xf32>
    %c0_16 = arith.constant 0 : index
    %c0_17 = arith.constant 0 : index
    %51 = vector.load %arg6[%c0_16, %c0_17] : memref<8x128xf32, #tpu.memory_space<vmem>>, vector<8x128xf32>
    tpu.vector_store %arg6[%c0_16, %c0_17], %50 {strides = array<i32>} : memref<8x128xf32, #tpu.memory_space<vmem>>, vector<8x128xf32>,
    return
  }
  func.func @transform_0(%arg0: i32) -> (i32, i32) {
    %c0_i32 = arith.constant 0 : i32
    %c0_i32_0 = arith.constant 0 : i32
    return %arg0, %c0_i32 : i32, i32
  }
  func.func @transform_1(%arg0: i32) -> (i32, i32) {
    %c0_i32 = arith.constant 0 : i32
    %c0_i32_0 = arith.constant 0 : i32
    return %arg0, %c0_i32 : i32, i32
  }
  func.func @transform_2(%arg0: i32) -> (i32, i32) {
    %c0_i32 = arith.constant 0 : i32
    %c0_i32_0 = arith.constant 0 : i32
    %c0_i32_1 = arith.constant 0 : i32
    return %c0_i32, %c0_i32_0 : i32, i32
  }
  func.func @transform_3(%arg0: i32) -> (i32, i32) {
    %c0_i32 = arith.constant 0 : i32
    %c0_i32_0 = arith.constant 0 : i32
    %c0_i32_1 = arith.constant 0 : i32
    return %c0_i32, %c0_i32_0 : i32, i32
  }
  func.func @transform_4(%arg0: i32) -> (i32, i32) {
    %c0_i32 = arith.constant 0 : i32
    %c0_i32_0 = arith.constant 0 : i32
    %c0_i32_1 = arith.constant 0 : i32
    return %c0_i32, %c0_i32_0 : i32, i32
  }
  func.func @transform_5(%arg0: i32) -> (i32, i32) {
    %c0_i32 = arith.constant 0 : i32
    %c0_i32_0 = arith.constant 0 : i32
    return %arg0, %c0_i32 : i32, i32
  }
}

</mosaic_0001>

<bundles_post_ra>
// kernel: tpu_custom_call.1
= control target key start
LH: loop header
LB: loop body
LE: loop exit
PB: predicated region body
PF: predicated region fallthrough
CT: control target
= control target key end

     0   :  { %10 = vsyncpa [#allocation3], 0  ;;  %s710_s0 = inlined_call_operand.vmem [shape: s32[16,3], index: 0, kind: input, shape index: {}]   ;;  %s711_s1 = inlined_call_operand.vmem [shape: f32[16,3], index: 1, kind: input, shape index: {}]   ;;  %s712_s2 = inlined_call_operand.vmem [shape: bf16[20,16], index: 2, kind: input, shape index: {}]   ;;  %s713_s3 = inlined_call_operand.vmem [shape: f32[1,3], index: 3, kind: input, shape index: {}]   ;;  %s714_s4 = inlined_call_operand.vmem [shape: f32[1,3], index: 4, kind: input, shape index: {}]   ;;  %s715_s5 = inlined_call_operand.hbm [shape: f32[16,128], index: 5, kind: output, shape index: {}]  }
   0x1   :  { %12 = vsyncpa [#allocation3 + $0x1], 0  ;;  %s608_s18 = smov 0   ;;  %s610_s19 = smov 0  }
   0x2   :  { %s612_s20 = smov 0   ;;  %s614_s21 = smov 0  }
   0x3 LB: > { %s629_s22 = sadd.s32 4294967295, %s570_s21   ;;  %s433_s23 = sadd.s32 4294967294, %s570_s21   ;;  %s570_s21 = sphi %s614_s21, %s721_s21   ;;  %s566_s20 = sphi %s612_s20, %s720_s20   ;;  %s562_s19 = sphi %s610_s19, %s719_s19   ;;  %s558_s18 = sphi %s608_s18, %s718_s18  }
   0x4   : > { %s633_s24 = sadd.s32 1, %s570_s21   ;;  %s140_s25 = sadd.s32 1, %s566_s20 }
   0x5   : > { %s137_s26 = ssub.s32 %s570_s21, %s633_s24  ;;  %p150_p0 = scmp.ne.s32.totalorder %s566_s20, %s562_s19 }
   0x6   : > { %p138_p1 = scmp.eq.s32.totalorder %s137_s26, 0  ;;  %p151_p2 = scmp.eq.s32.totalorder %s629_s22, 1 }
   0x7   : > { %p156_p3 = scmp.ne.s32.totalorder %s562_s19, %s558_s18  ;;  %p157_p4 = scmp.eq.s32.totalorder %s433_s23, 1 }
   0x8   : > { %s644_s27 = scalar_select %p138_p1, %s566_s20, %s140_s25  }
   0x9   : > { %p646_p5 = por %p151_p2, %p150_p0  ;;  %p650_p6 = por %p157_p4, %p156_p3 }
   0xa   : > { %p436_p7 = scmp.ge.s32.totalorder %s570_s21, 1  ;;  %p198_p8 = scmp.lt.s32.totalorder %s570_s21, 3 }
   0xc   : > { %p199_p9 = pnand %p436_p7, %p198_p8 }
   0xd   : > { %p229_p10 = scmp.lt.s32.totalorder (!%p199_p9), %s629_s22, 1  ;;  %s449_s8 = sshll.u32 (!%p199_p9), %s629_s22, 3 }
   0xe   : > { %202 = sbr.rel (%p199_p9) target bundleno = 429 (0x1ad), region = 40  ;;  %s357_s11 = scalar_lea.hbm (!%p199_p9), %s715_s5, %s449_s8 }
   0xf   : > { %s361_s14 = sshll.u32 (!%p199_p9), %s357_s11, 4  ;;  %s528_s25 = scalar_lea.hbm (!%p199_p9), %s715_s5, 16  ;;  %s362_s14 = int_to_ptr.hbm [resolvable:$true] %s361_s14 }
  0x10   : > { %s522_s16 = sshra.s32 (!%p199_p9), %s362_s14, 4  ;;  %s523_s16 = int_to_ptr.hbm [resolvable:$true] %s522_s16 }
  0x11   : > { %p529_p0 = scmp.lt.s32.totalorder (!%p199_p9), %s523_s16, %s715_s5 }
  0x13   : > { %v572_v0 = vmov 2   ;;  %v573_v1 = vmov 0   ;;  %s230_s30 = scalar_select %p229_p10, %s629_s22, 1  ;;  %v574_v3 = vmov 1   ;;  %vm297_vm0 = vcmask 23552   ;;  %v452_v10 = vld [vmem:[%s712_s2] sm:$0xff] }
  0x14   : > { %500 = vset.pattern.permute.xlu1 %v572_v0  ;;  %498 = vset.pattern.permute.xlu0 %v573_v1  ;;  %v265_v6 = vld [vmem:[%s712_s2 + $0x8] sm:$0x3]  ;;  %vm279_vm1 = vcmask 1041408   ;;  %v239_v11 = vlaneseq  ;;  %v575_v15 = vmov 0.0   ;;  %vm275_vm5 = vcmask 162816   ;;  %s524_s22 = scalar_lea.hbm %s523_s16, 8 }
  0x15   : > { %s438_s6 = sshll.u32 %s230_s30, 3  ;;  %v271_v7 = vunpack.c.l.b16 %v265_v6  ;;  %v576_v23 = vmov 3.0   ;;  %v502_v46 = vld [vmem:[%s713_s3] ss:$0 sm:$0xff]  ;;  %s577_s30 = smov 16   ;;  %vm341_vm10 = vcmask 130048  }
  0x16   : > { %s232_s9 = scalar_lea.vmem %s710_s0, %s438_s6  ;;  %s236_s12 = scalar_lea.vmem %s711_s1, %s438_s6  ;;  %v240_v13 = vand.u32 127, %v239_v11  ;;  %504 = vrcp.f32 %v576_v23  ;;  %v503_v49 = vld [vmem:[%s714_s4] ss:$0 sm:$0xff]  ;;  %vm343_vm11 = vcmask 154624  }
  0x17   : > { %v238_v2 = vld [vmem:[%s232_s9] sm:$0xff]  ;;  %v273_v8 = vpack.c.b16 %v271_v7, %v271_v7  ;;  %s226_s6 = sand.u32 1, %s562_s19   ;;  %p525_p11 = scmp.ne.s32.totalorder %s523_s16, %s524_s22 }
  0x18   : > { %256 = vperm.xlu1 %500, %v238_v2   ;;  %242 = vperm.xlu0 %498, %v238_v2   ;;  %v296_v4 = vld [vmem:[%s236_s12] sm:$0xff]  ;;  %s437_s7 = sshll.u32 %s226_s6, 3  ;;  %s347_s15 = scalar_lea.sflag [#allocation3], %s226_s6 }
  0x19   : > { %v298_v5 = vsel %vm297_vm0, %v296_v4, 0.0  ;;  %v281_v9 = vsel %vm279_vm1, %v273_v8, 0  ;;  %s228_s12 = scalar_lea.vmem [#allocation2], %s437_s7  ;;  %p526_p12 = pnand %p525_p11, %p646_p5 }
  0x1a   : > { %289 = vmatpush.bf16.msra.mxu0 %v281_v9  ;;  %s359_s13 = sshll.u32 %s228_s12, 4  ;;  %p530_p1 = scmp.lt.s32.totalorder %s528_s25, %s524_s22  ;;  %s360_s13 = int_to_ptr.vmem [resolvable:$true] %s359_s13 }
  0x1b   : > { %p527_p13 = pneg %p526_p12 }
  0x1c   : > { %v505_v24 = vpop.eup %504  ;;  %p531_p2 = por %p530_p1, %p529_p0 }
  0x1d   : > { %v302_v25 = vmul.f32 3.0, %v505_v24  ;;  %vm306_vm6 = vweird.f32 %v505_v24 }
  0x1e   : > { %290 = vmatpush.bf16.msra.mxu0 %v452_v10  ;;  %p532_p3 = pnand %p531_p2, %p527_p13 }
  0x1f   : > { %v303_v26 = vsub.f32 1.0, %v302_v25 }
  0x20   : > { %499 = vset.pattern.permute.xlu0 %v574_v3 }
  0x21   : > { %249 = vperm.xlu0 %499, %v238_v2   ;;  %v304_v27 = vmul.f32 %v505_v24, %v303_v26 }
  0x23   : > { %v305_v28 = vadd.f32 %v505_v24, %v304_v27 }
  0x25   : > { %v307_v29 = vsel %vm306_vm6, %v505_v24, %v305_v28 }
  0x29   : > { %501 = vset.pattern.permute.xlu0 %v572_v0 }
  0x42   : > { %299 = vadd.xlane.f32.xlu1 %v298_v5 }
  0x8a   : > { %v243_v12 = vpop.permute.xlu0 %242  ;;  %v257_v14 = vpop.permute.xlu1 %256 }
  0x8b   : > { %vm244_vm2 = vcmp.eq.s32.totalorder %v240_v13, %v243_v12  ;;  %vm258_vm3 = vcmp.eq.s32.totalorder %v240_v13, %v257_v14 }
  0x8c   : > { %v440_v16 = vsel %vm244_vm2, 1.0, %v575_v15  ;;  %v442_v20 = vsel %vm258_vm3, 1.0, %v575_v15 }
  0x93   : > { %v250_v17 = vpop.permute.xlu0 %249 }
  0x94   : > { %vm251_vm4 = vcmp.eq.s32.totalorder %v240_v13, %v250_v17 }
  0x95   : > { %v441_v18 = vsel %vm251_vm4, 1.0, %v575_v15 }
  0x96   : > { %v254_v19 = vadd.f32 %v441_v18, %v440_v16 }
  0x98   : > { %v261_v21 = vadd.f32 %v442_v20, %v254_v19 }
  0x9a   : > { %v262_v22 = vpack.c.bf16 %v261_v21, %v261_v21 }
  0x9c   : > { %447 = vmatmul.msk.bf16.vlgmr.msra.gmra.mxu0 %vm275_vm5, %v262_v22 }
  0xb5   : > { %v300_v30 = vpop.xlane.xlu1 %299 }
  0xb6   : > { %v308_v31 = vmul.f32 %v307_v29, %v300_v30 }
  0xb8   : > { %v309_v32 = vsub.f32 %v296_v4, %v308_v31 }
  0xba   : > { %v310_v33 = vmul.f32 %v309_v32, %v309_v32 }
  0xbc   : > { %v311_v34 = vsel %vm297_vm0, %v310_v33, 0.0 }
  0xbd   : > { %312 = vadd.xlane.f32.xlu2 %v311_v34 }
 0x119   : > { %v292_v35 = vpop.f32.mrf.mxu0 }
 0x121   : > { %v294_v36 = vpop.f32.mrf.mxu0 }
 0x130   : > { %v313_v37 = vpop.xlane.xlu2 %312 }
 0x131   : > { %v314_v38 = vmul.f32 %v313_v37, %v307_v29 }
 0x133   : > { %v315_v39 = vadd.f32 1e-05, %v314_v38 }
 0x135   : > { %506 = vrsqrt.f32 %v315_v39  ;;  %vm322_vm8 = vweird.f32 %v315_v39 }
 0x13b   : > { %v507_v40 = vpop.eup %506 }
 0x13c   : > { %v317_v41 = vmul.f32 %v507_v40, %v315_v39  ;;  %vm323_vm7 = vweird.f32 %v507_v40 }
 0x13d   : > { %vm324_vm9 = vmor %vm322_vm8, %vm323_vm7 }
 0x13e   : > { %v318_v42 = vmul.f32 %v507_v40, %v317_v41 }
 0x140   : > { %v319_v43 = vmul.f32 0.5, %v318_v42 }
 0x142   : > { %v320_v44 = vsub.f32 1.5, %v319_v43 }
 0x144   : > { %v321_v45 = vmul.f32 %v507_v40, %v320_v44 }
 0x146   : > { %v325_v47 = vsel %vm324_vm9, %v507_v40, %v321_v45 }
 0x147   : > { %v326_v48 = vmul.f32 %v325_v47, %v309_v32 }
 0x149   : > { %v331_v50 = vmul.f32 %v502_v46, %v326_v48 }
 0x14b   : > { %v336_v51 = vadd.f32 %v503_v49, %v331_v50 }
 0x14d   : > { %338 = vrot.lane.b32.xlu2 %v336_v51, %s577_s30 }
 0x1a7   : > { %v339_v52 = vpop.permute.xlu2 %338 }
 0x1a8   : > { %v342_v53 = vsel %vm341_vm10, %v292_v35, %v339_v52 }
 0x1a9   : > { %v344_v54 = vsel %vm343_vm11, %v342_v53, 0.0 }
 0x1aa   : > { %345 = vst [vmem:[%s228_s12] sm:$0xff] %v344_v54 }
 0x1ab   : > { %535 = shalt.err (!%p532_p3)
}
 0x1ac   : > { %453 = dma.vmem_to_hbm [thread:$0]  (%p646_p5), %s360_s13, 128, %s362_s14, %s347_s15  }
 0x1ad PF: > { %p459_p4 = scmp.ge.s32.totalorder %s570_s21, 2  ;;  %s373_s6 = sand.u32 1, %s558_s18  }
 0x1ae   : > { %s374_s7 = scalar_lea.sflag [#allocation3], %s373_s6 }
 0x1af   : > { %p456_p7 = pnand %p459_p4, %p650_p6 }
 0x1b1   : > { %p457_p8 = pneg %p456_p7 }
 0x1b3   : > { %553 = dma.done.wait (%p457_p8), %s374_s7, 128  }
 0x1b4   : > { %555 = vsyncadd (%p457_p8), %s374_s7, 4294967168  ;;  %p15_p9 = scmp.ge.s32.totalorder %s633_s24, 4   ;;  %s718_s18 = smov %s562_s19 }
 0x1b5   : > { %s719_s19 = smov %s566_s20  ;;  %s720_s20 = smov %s644_s27 }
 0x1b6   : > { %s721_s21 = smov %s633_s24  ;;  %17 = sbr.rel (!%p15_p9) target bundleno = 3 (0x3), region = 78 }
 0x1bb   :  { %380 = vsyncpa [#allocation3], 1 }
 0x1bc   :  { %382 = vsyncpa [#allocation3 + $0x1], 1 }

</bundles_post_ra>
